<compile_context>
chip_gen: v6e
topology: v6e:2x2x1
jax: 0.10.0
libtpu: 0.0.40
codegen_flags: <defaults>
</compile_context>

<pallas_src>
import functools

import jax
import jax.numpy as jnp
from jax.experimental import pallas as pl
from jax.experimental.pallas import tpu as pltpu


def dqn_kernel(x_ref, w1_ref, b1_ref, w2_ref, b2_ref, w3_ref, b3_ref, fc_ref,
               o_ref):
    # x_ref: (T, 48) f32 block -- batch on sublanes, (channel, position) on
    # lanes in channel-major order (col = c*4 + l). Cast to bf16 in-kernel.
    cd = w1_ref.dtype
    x = x_ref[...].astype(cd)
    # Layer 1: conv1(12->16) per position + bn1 (folded) + relu
    h = jnp.dot(x, w1_ref[...], preferred_element_type=jnp.float32)
    h = jnp.maximum(h + b1_ref[...], 0.0)                        # (T, 64) f32
    # Layer 2: conv2(16->32) per position + bn2 (folded) + relu
    h = jnp.dot(h.astype(cd), w2_ref[...], preferred_element_type=jnp.float32)
    h = jnp.maximum(h + b2_ref[...], 0.0)                        # (T, 128) f32
    # Relayout: batch -> lanes via a fully (8,128)-aligned f32 transpose (XLU).
    ht = jnp.transpose(h, (1, 0))                                # (128, T) f32
    # Layer 3: conv3(32->3) per position + bn3 (folded) + relu
    # (w3_ref rows are position-major: row = l*3 + c)
    h = jnp.dot(w3_ref[...], ht.astype(cd), preferred_element_type=jnp.float32)
    h = jnp.maximum(h + b3_ref[...], 0.0)                        # (12, T) f32
    # fc1: Linear(4,1) over positions as a VPU weighted sum of (3, T) slabs
    # (avoids a 3-row MXU dot that would re-stream T vectors).
    acc = fc_ref[4] + fc_ref[0] * h[0:3, :]
    acc = acc + fc_ref[1] * h[3:6, :]
    acc = acc + fc_ref[2] * h[6:9, :]
    acc = acc + fc_ref[3] * h[9:12, :]
    o_ref[...] = acc.astype(o_ref.dtype)                         # (3, T)


@functools.partial(jax.jit, static_argnames=("tile", "compute_dtype"))
def dqn_forward(x_ncl, params, *, tile=8192, compute_dtype=jnp.bfloat16):
    """x_ncl: (B, 12, L=4) float32, PyTorch NCL layout. Returns (B, 3)."""
    B, C_in, L = x_ncl.shape
    assert C_in == 12 and L == 4
    eps = 1e-5

    # ---- fold eval-mode BN into conv weights / biases (w: (Cin, Cout)) ----
    def fold_bn(w, b, gamma, beta, mean, var):
        s = gamma / jnp.sqrt(var + eps)
        return w * s[None, :], b * s + (beta - mean * s)

    w1, b1 = fold_bn(params["w1"], params["b1"], params["g1"],
                     params["beta1"], params["m1"], params["v1"])
    w2, b2 = fold_bn(params["w2"], params["b2"], params["g2"],
                     params["beta2"], params["m2"], params["v2"])
    w3, b3 = fold_bn(params["w3"], params["b3"], params["g3"],
                     params["beta3"], params["m3"], params["v3"])

    # ---- fold the position axis L into the channel axis (B-independent) ----
    # The x view is channel-major on its last axis: col = c*L + l.
    eyeL = jnp.eye(L, dtype=jnp.float32)
    w1f = jnp.kron(w1, eyeL)                                      # (48, 64)
    w2f = jnp.kron(w2, eyeL)                                      # (64, 128)
    # Layer-3 weight in transposed (channels-on-sublanes) orientation:
    # rows position-major (l*3 + c), cols channel-major (ci*L + l).
    w3f = (w3.T[None, :, :, None] * eyeL[:, None, None, :]).reshape(3 * L,
                                                                    32 * L)
    b1r = jnp.repeat(b1, L).reshape(1, -1).astype(jnp.float32)    # (1, 64)
    b2r = jnp.repeat(b2, L).reshape(1, -1).astype(jnp.float32)    # (1, 128)
    b3c = jnp.tile(b3, L).reshape(-1, 1).astype(jnp.float32)      # (12, 1)
    fc = jnp.concatenate([params["wfc"], params["bfc"]]).astype(jnp.float32)

    # ---- x stays in its natural HBM layout: contiguous (B, 48) f32 view ----
    x2d = x_ncl.reshape(B, C_in * L).astype(jnp.float32)

    # ---- batch tiling: >=2 parallel grid steps when B > 256 (megacore) ----
    tile = max(128, (int(tile) // 128) * 128)       # defensive 128-rounding
    b_ceil = ((B + 127) // 128) * 128
    if B > 256:
        half = ((pl.cdiv(B, 2) + 127) // 128) * 128
        tile_eff = min(tile, half)
    else:
        tile_eff = min(tile, b_ceil)
    assert tile_eff % 128 == 0 and tile_eff >= 128
    grid = (pl.cdiv(B, tile_eff),)    # ragged last block handled by Pallas

    cd = compute_dtype
    out_t = pl.pallas_call(
        dqn_kernel,
        out_shape=jax.ShapeDtypeStruct((3, B), jnp.float32),
        grid=grid,
        in_specs=[
            pl.BlockSpec((tile_eff, C_in * L), lambda i: (i, 0)),  # x block
            pl.BlockSpec((C_in * L, 16 * L), lambda i: (0, 0)),    # w1f
            pl.BlockSpec((1, 16 * L), lambda i: (0, 0)),           # b1
            pl.BlockSpec((16 * L, 32 * L), lambda i: (0, 0)),      # w2f
            pl.BlockSpec((1, 32 * L), lambda i: (0, 0)),           # b2
            pl.BlockSpec((3 * L, 32 * L), lambda i: (0, 0)),       # w3f
            pl.BlockSpec((3 * L, 1), lambda i: (0, 0)),            # b3
            pl.BlockSpec(memory_space=pltpu.MemorySpace.SMEM),     # fc scalars
        ],
        out_specs=pl.BlockSpec((3, tile_eff), lambda i: (0, i)),
        compiler_params=pltpu.CompilerParams(
            dimension_semantics=("parallel",),
            vmem_limit_bytes=48 * 1024 * 1024,
        ),
    )(x2d, w1f.astype(cd), b1r, w2f.astype(cd), b2r, w3f.astype(cd), b3c, fc)

    return out_t.T                                                # (B, 3)


def init_params(key):
    """Deterministic init matching PyTorch default shapes (uniform +/- 1/sqrt(fan_in))."""
    ks = jax.random.split(key, 8)

    def unif(k, shape, fan_in):
        bound = 1.0 / jnp.sqrt(float(fan_in))
        return jax.random.uniform(k, shape, jnp.float32, -bound, bound)

    p = {
        # conv weights stored as (Cin, Cout)
        "w1": unif(ks[0], (12, 16), 12), "b1": unif(ks[1], (16,), 12),
        "w2": unif(ks[2], (16, 32), 16), "b2": unif(ks[3], (32,), 16),
        "w3": unif(ks[4], (32, 3), 32),  "b3": unif(ks[5], (3,), 32),
        "wfc": unif(ks[6], (4,), 4),     "bfc": unif(ks[7], (1,), 4),
    }
    # BatchNorm1d fresh state (eval mode): gamma=1, beta=0, mean=0, var=1
    for i, c in zip((1, 2, 3), (16, 32, 3)):
        p[f"g{i}"] = jnp.ones((c,), jnp.float32)
        p[f"beta{i}"] = jnp.zeros((c,), jnp.float32)
        p[f"m{i}"] = jnp.zeros((c,), jnp.float32)
        p[f"v{i}"] = jnp.ones((c,), jnp.float32)
    return p


def dqn_reference(x_ncl, params):
    """Pure-JAX f32 reference of the same forward (eval-mode BN)."""
    eps = 1e-5

    def layer(h, w, b, g, beta, m, v):  # h: (B, L, Cin)
        z = jnp.einsum("blc,co->blo", h, w) + b
        z = g * (z - m) / jnp.sqrt(v + eps) + beta
        return jnp.maximum(z, 0.0)

    h = jnp.transpose(x_ncl, (0, 2, 1))  # (B, L, 12)
    h = layer(h, params["w1"], params["b1"], params["g1"], params["beta1"], params["m1"], params["v1"])
    h = layer(h, params["w2"], params["b2"], params["g2"], params["beta2"], params["m2"], params["v2"])
    h = layer(h, params["w3"], params["b3"], params["g3"], params["beta3"], params["m3"], params["v3"])
    out = jnp.einsum("blc,l->bc", h, params["wfc"]) + params["bfc"][0]
    return out  # (B, 3)


if __name__ == "__main__":
    key = jax.random.PRNGKey(0)
    k_param, k_x, k_x2 = jax.random.split(key, 3)
    params = init_params(k_param)

    # Small deterministic test (B=2), PyTorch NCL input (single ragged block).
    B, C, L = 2, 12, 4
    x = jax.random.normal(k_x, (B, C, L), jnp.float32)
    out = jax.block_until_ready(dqn_forward(x, params))
    ref = dqn_reference(x, params)
    assert out.shape == (B, 3), out.shape
    assert jnp.allclose(out, ref, atol=5e-2, rtol=5e-2), (out, ref)

    # Larger batch exercises the multi-step parallel grid + ragged tail block.
    B2 = 1000
    x2 = jax.random.normal(k_x2, (B2, C, L), jnp.float32)
    out2 = jax.block_until_ready(dqn_forward(x2, params))
    ref2 = dqn_reference(x2, params)
    assert out2.shape == (B2, 3), out2.shape
    assert jnp.allclose(out2, ref2, atol=5e-2, rtol=5e-2)

    print("KERNEL_OK")
</pallas_src>

<mosaic_0001>
module attributes {stable_mosaic.version = 11 : i64} {
  func.func @dqn_kernel(%arg0: i32, %arg1: memref<128x48xf32, #tpu.memory_space<vmem>>, %arg2: memref<48x64xbf16, #tpu.memory_space<vmem>>, %arg3: memref<1x64xf32, #tpu.memory_space<vmem>>, %arg4: memref<64x128xbf16, #tpu.memory_space<vmem>>, %arg5: memref<1x128xf32, #tpu.memory_space<vmem>>, %arg6: memref<12x128xbf16, #tpu.memory_space<vmem>>, %arg7: memref<12x1xf32, #tpu.memory_space<vmem>>, %arg8: memref<5xf32, #tpu.memory_space<smem>>, %arg9: memref<3x128xf32, #tpu.memory_space<vmem>>) attributes {dimension_semantics = [#tpu.dimension_semantics<parallel>], iteration_bounds = array<i64: 1>, scalar_prefetch = 0 : i64, scratch_operands = 0 : i64, tpu.core_type = #tpu.core_type<tc>, window_params = [{transform_indices = @transform_0, window_bounds = array<i64: 128, 48>}, {pipeline_mode = #tpu.pipeline_mode<synchronous>, transform_indices = @transform_1, window_bounds = array<i64: 48, 64>}, {pipeline_mode = #tpu.pipeline_mode<synchronous>, transform_indices = @transform_2, window_bounds = array<i64: 1, 64>}, {pipeline_mode = #tpu.pipeline_mode<synchronous>, transform_indices = @transform_3, window_bounds = array<i64: 64, 128>}, {pipeline_mode = #tpu.pipeline_mode<synchronous>, transform_indices = @transform_4, window_bounds = array<i64: 1, 128>}, {pipeline_mode = #tpu.pipeline_mode<synchronous>, transform_indices = @transform_5, window_bounds = array<i64: 12, 128>}, {pipeline_mode = #tpu.pipeline_mode<synchronous>, transform_indices = @transform_6, window_bounds = array<i64: 12, 1>}, {transform_indices = @transform_7, window_bounds = array<i64: 5>}, {transform_indices = @transform_8, window_bounds = array<i64: 3, 128>}]} {
    %c0 = arith.constant 0 : index
    %c0_0 = arith.constant 0 : index
    %0 = vector.load %arg1[%c0, %c0_0] : memref<128x48xf32, #tpu.memory_space<vmem>>, vector<128x48xf32>
    %1 = arith.truncf %0 : vector<128x48xf32> to vector<128x48xbf16>
    %c0_1 = arith.constant 0 : index
    %c0_2 = arith.constant 0 : index
    %2 = vector.load %arg2[%c0_1, %c0_2] : memref<48x64xbf16, #tpu.memory_space<vmem>>, vector<48x64xbf16>
    %cst = arith.constant dense<0.000000e+00> : vector<128x64xf32>
    %3 = tpu.matmul %1, %2, %cst {dimension_numbers = #tpu.dot_dimension_numbers<[1], [0], [0], [1], [0, 0, 1, 1], [], []>} : vector<128x48xbf16>, vector<48x64xbf16>, vector<128x64xf32> -> vector<128x64xf32>
    %c0_3 = arith.constant 0 : index
    %c0_4 = arith.constant 0 : index
    %4 = vector.load %arg3[%c0_3, %c0_4] : memref<1x64xf32, #tpu.memory_space<vmem>>, vector<1x64xf32>
    %5 = vector.broadcast %4 : vector<1x64xf32> to vector<128x64xf32>
    %6 = arith.addf %3, %5 : vector<128x64xf32>
    %cst_5 = arith.constant 0.000000e+00 : f32
    %7 = vector.broadcast %cst_5 : f32 to vector<128x64xf32>
    %8 = arith.maximumf %6, %7 : vector<128x64xf32>
    %9 = arith.truncf %8 : vector<128x64xf32> to vector<128x64xbf16>
    %c0_6 = arith.constant 0 : index
    %c0_7 = arith.constant 0 : index
    %10 = vector.load %arg4[%c0_6, %c0_7] : memref<64x128xbf16, #tpu.memory_space<vmem>>, vector<64x128xbf16>
    %cst_8 = arith.constant dense<0.000000e+00> : vector<128x128xf32>
    %11 = tpu.matmul %9, %10, %cst_8 {dimension_numbers = #tpu.dot_dimension_numbers<[1], [0], [0], [1], [0, 0, 1, 1], [], []>} : vector<128x64xbf16>, vector<64x128xbf16>, vector<128x128xf32> -> vector<128x128xf32>
    %c0_9 = arith.constant 0 : index
    %c0_10 = arith.constant 0 : index
    %12 = vector.load %arg5[%c0_9, %c0_10] : memref<1x128xf32, #tpu.memory_space<vmem>>, vector<1x128xf32>
    %13 = vector.broadcast %12 : vector<1x128xf32> to vector<128x128xf32>
    %14 = arith.addf %11, %13 : vector<128x128xf32>
    %cst_11 = arith.constant 0.000000e+00 : f32
    %15 = vector.broadcast %cst_11 : f32 to vector<128x128xf32>
    %16 = arith.maximumf %14, %15 : vector<128x128xf32>
    %17 = tpu.transpose %16, [1, 0] : vector<128x128xf32> -> vector<128x128xf32>
    %c0_12 = arith.constant 0 : index
    %c0_13 = arith.constant 0 : index
    %18 = vector.load %arg6[%c0_12, %c0_13] : memref<12x128xbf16, #tpu.memory_space<vmem>>, vector<12x128xbf16>
    %19 = arith.truncf %17 : vector<128x128xf32> to vector<128x128xbf16>
    %cst_14 = arith.constant dense<0.000000e+00> : vector<12x128xf32>
    %20 = tpu.matmul %18, %19, %cst_14 {dimension_numbers = #tpu.dot_dimension_numbers<[1], [0], [0], [1], [0, 0, 1, 1], [], []>} : vector<12x128xbf16>, vector<128x128xbf16>, vector<12x128xf32> -> vector<12x128xf32>
    %c0_15 = arith.constant 0 : index
    %c0_16 = arith.constant 0 : index
    %21 = vector.load %arg7[%c0_15, %c0_16] : memref<12x1xf32, #tpu.memory_space<vmem>>, vector<12x1xf32>
    %22 = vector.broadcast %21 : vector<12x1xf32> to vector<12x128xf32>
    %23 = arith.addf %20, %22 : vector<12x128xf32>
    %cst_17 = arith.constant 0.000000e+00 : f32
    %24 = vector.broadcast %cst_17 : f32 to vector<12x128xf32>
    %25 = arith.maximumf %23, %24 : vector<12x128xf32>
    %c4 = arith.constant 4 : index
    %26 = memref.load %arg8[%c4] : memref<5xf32, #tpu.memory_space<smem>>
    %c0_18 = arith.constant 0 : index
    %27 = memref.load %arg8[%c0_18] : memref<5xf32, #tpu.memory_space<smem>>
    %28 = vector.extract_strided_slice %25 {offsets = [0, 0], sizes = [3, 128], strides = [1, 1]} : vector<12x128xf32> to vector<3x128xf32>
    %29 = vector.broadcast %27 : f32 to vector<3x128xf32>
    %30 = arith.mulf %29, %28 : vector<3x128xf32>
    %31 = vector.broadcast %26 : f32 to vector<3x128xf32>
    %32 = arith.addf %31, %30 : vector<3x128xf32>
    %c1 = arith.constant 1 : index
    %33 = memref.load %arg8[%c1] : memref<5xf32, #tpu.memory_space<smem>>
    %34 = vector.extract_strided_slice %25 {offsets = [3, 0], sizes = [3, 128], strides = [1, 1]} : vector<12x128xf32> to vector<3x128xf32>
    %35 = vector.broadcast %33 : f32 to vector<3x128xf32>
    %36 = arith.mulf %35, %34 : vector<3x128xf32>
    %37 = arith.addf %32, %36 : vector<3x128xf32>
    %c2 = arith.constant 2 : index
    %38 = memref.load %arg8[%c2] : memref<5xf32, #tpu.memory_space<smem>>
    %39 = vector.extract_strided_slice %25 {offsets = [6, 0], sizes = [3, 128], strides = [1, 1]} : vector<12x128xf32> to vector<3x128xf32>
    %40 = vector.broadcast %38 : f32 to vector<3x128xf32>
    %41 = arith.mulf %40, %39 : vector<3x128xf32>
    %42 = arith.addf %37, %41 : vector<3x128xf32>
    %c3 = arith.constant 3 : index
    %43 = memref.load %arg8[%c3] : memref<5xf32, #tpu.memory_space<smem>>
    %44 = vector.extract_strided_slice %25 {offsets = [9, 0], sizes = [3, 128], strides = [1, 1]} : vector<12x128xf32> to vector<3x128xf32>
    %45 = vector.broadcast %43 : f32 to vector<3x128xf32>
    %46 = arith.mulf %45, %44 : vector<3x128xf32>
    %47 = arith.addf %42, %46 : vector<3x128xf32>
    %c0_19 = arith.constant 0 : index
    %c0_20 = arith.constant 0 : index
    %48 = vector.load %arg9[%c0_19, %c0_20] : memref<3x128xf32, #tpu.memory_space<vmem>>, vector<3x128xf32>
    tpu.vector_store %arg9[%c0_19, %c0_20], %47 {strides = array<i32>} : memref<3x128xf32, #tpu.memory_space<vmem>>, vector<3x128xf32>,
    return
  }
  func.func @transform_0(%arg0: i32) -> (i32, i32) {
    %c0_i32 = arith.constant 0 : i32
    %c0_i32_0 = arith.constant 0 : i32
    return %arg0, %c0_i32 : i32, i32
  }
  func.func @transform_1(%arg0: i32) -> (i32, i32) {
    %c0_i32 = arith.constant 0 : i32
    %c0_i32_0 = arith.constant 0 : i32
    %c0_i32_1 = arith.constant 0 : i32
    return %c0_i32, %c0_i32_0 : i32, i32
  }
  func.func @transform_2(%arg0: i32) -> (i32, i32) {
    %c0_i32 = arith.constant 0 : i32
    %c0_i32_0 = arith.constant 0 : i32
    %c0_i32_1 = arith.constant 0 : i32
    return %c0_i32, %c0_i32_0 : i32, i32
  }
  func.func @transform_3(%arg0: i32) -> (i32, i32) {
    %c0_i32 = arith.constant 0 : i32
    %c0_i32_0 = arith.constant 0 : i32
    %c0_i32_1 = arith.constant 0 : i32
    return %c0_i32, %c0_i32_0 : i32, i32
  }
  func.func @transform_4(%arg0: i32) -> (i32, i32) {
    %c0_i32 = arith.constant 0 : i32
    %c0_i32_0 = arith.constant 0 : i32
    %c0_i32_1 = arith.constant 0 : i32
    return %c0_i32, %c0_i32_0 : i32, i32
  }
  func.func @transform_5(%arg0: i32) -> (i32, i32) {
    %c0_i32 = arith.constant 0 : i32
    %c0_i32_0 = arith.constant 0 : i32
    %c0_i32_1 = arith.constant 0 : i32
    return %c0_i32, %c0_i32_0 : i32, i32
  }
  func.func @transform_6(%arg0: i32) -> (i32, i32) {
    %c0_i32 = arith.constant 0 : i32
    %c0_i32_0 = arith.constant 0 : i32
    %c0_i32_1 = arith.constant 0 : i32
    return %c0_i32, %c0_i32_0 : i32, i32
  }
  func.func @transform_7(%arg0: i32) -> i32 {
    %c0_i32 = arith.constant 0 : i32
    %c0_i32_0 = arith.constant 0 : i32
    return %c0_i32 : i32
  }
  func.func @transform_8(%arg0: i32) -> (i32, i32) {
    %c0_i32 = arith.constant 0 : i32
    %c0_i32_0 = arith.constant 0 : i32
    return %c0_i32, %arg0 : i32, i32
  }
}

</mosaic_0001>

<bundles_post_ra>
// kernel: tile.8
= control target key start
LH: loop header
LB: loop body
LE: loop exit
PB: predicated region body
PF: predicated region fallthrough
CT: control target
= control target key end

     0   :  { %s22_s0 = inlined_call_operand.vmem [shape: f32[3], index: 0, kind: input, shape index: {}]   ;;  %s23_s1 = inlined_call_operand.vmem [shape: f32[4,3], index: 1, kind: output, shape index: {}]  }
   0x1   :  { %v4_v0 = vld [vmem:[%s22_s0] ss:$0 sm:$0xff] }
   0x2   :  { %5 = vst [vmem:[%s23_s1] sm:$0xf] %v4_v0 }

// kernel: tile.0
= control target key start
LH: loop header
LB: loop body
LE: loop exit
PB: predicated region body
PF: predicated region fallthrough
CT: control target
= control target key end

     0   :  { %vm8_vm0 = vcmask 7168   ;;  %s27_s10 = smov 126   ;;  %s50_s0 = inlined_call_operand.vmem [shape: f32[4,3], index: 0, kind: input, shape index: {}]   ;;  %s51_s1 = inlined_call_operand.vmem [shape: f32[12,1], index: 1, kind: output, shape index: {}]  }
   0x1   :  { %v5_v0 = vld [vmem:[%s50_s0] sm:$0xf]  ;;  %s26_s0 = smov 127  }
   0x2   :  { %6 = vst [vmem:[#allocation0] sm:$0xf] %v5_v0 }
   0x9   :  { %v10_v1 = vld [vmem:[#allocation0] sm:$0xf]  }
   0xa   :  { %v7_v2 = vld [vmem:[#allocation0] sm:$0xf]   ;;  %11 = vrot.lane.b32.xlu0 %v10_v1, %s26_s0 }
   0xb   :  { %9 = vst.msk [vmem:[%s51_s1] ss:$3 sm:$0xf] %vm8_vm0, %v7_v2   ;;  %v16_v3 = vld [vmem:[#allocation0] sm:$0xf]  }
   0xe   :  { %17 = vrot.lane.b32.xlu0 %v16_v3, %s27_s10 }
  0x7c   :  { %v12_v4 = vpop.permute.xlu0 %11  }
  0x7d   :  { %22 = vst.msk [vmem:[%s51_s1 + $0x1] ss:$3 sm:$0xf] %vm8_vm0, %v12_v4  }
  0x80   :  { %v18_v5 = vpop.permute.xlu0 %17  }
  0x81   :  { %23 = vst.msk [vmem:[%s51_s1 + $0x2] ss:$3 sm:$0xf] %vm8_vm0, %v18_v5  }

// kernel: dqn_forward.1
= control target key start
LH: loop header
LB: loop body
LE: loop exit
PB: predicated region body
PF: predicated region fallthrough
CT: control target
= control target key end

     0   :  { %13 = vsyncpa [#allocation3], 0  ;;  %s873_s0 = inlined_call_operand.vmem [shape: f32[2,48], index: 0, kind: input, shape index: {}]   ;;  %s874_s1 = inlined_call_operand.vmem [shape: bf16[48,64], index: 1, kind: input, shape index: {}]   ;;  %s875_s2 = inlined_call_operand.vmem [shape: f32[1,64], index: 2, kind: input, shape index: {}]   ;;  %s876_s3 = inlined_call_operand.vmem [shape: bf16[64,128], index: 3, kind: input, shape index: {}]   ;;  %s877_s4 = inlined_call_operand.vmem [shape: f32[1,128], index: 4, kind: input, shape index: {}]   ;;  %s878_s5 = inlined_call_operand.vmem [shape: bf16[12,128], index: 5, kind: input, shape index: {}]   ;;  %s879_s6 = inlined_call_operand.vmem [shape: f32[12,1], index: 6, kind: input, shape index: {}]   ;;  %s880_s7 = inlined_call_operand.vmem [shape: f32[5], index: 7, kind: input, shape index: {}]   ;;  %s881_s8 = inlined_call_operand.vmem [shape: f32[3,2], index: 8, kind: output, shape index: {}]  }
   0x1   :  { %s34_s29 = sshll.u32 %s880_s7, 4  ;;  %s35_s29 = int_to_ptr.vmem [resolvable:$true] %s34_s29 }
   0x2   :  { %s704_s30 = scalar_lea.vmem %s35_s29, 16  ;;  %p709_p1 = scmp.lt.s32.totalorder %s35_s29, %s35_s29 }
   0x3   :  { %p705_p0 = scmp.ne.s32.totalorder %s35_s29, %s704_s30  ;;  %p710_p2 = scmp.lt.s32.totalorder %s704_s30, %s704_s30 }
   0x5   :  { %p711_p3 = por %p710_p2, %p709_p1 }
   0x7   :  { %p712_p4 = pnand %p711_p3, %p705_p0 }
   0x9   :  { %715 = shalt.err (!%p712_p4)
}
   0xa   :  { %s718_s9 = smov [#allocation2]  }
   0xb   :  { %37 = dma.vmem_to_smem %s35_s29, 16, %s718_s9, [#allocation3]  }
   0xc   :  { %716 = dma.done.wait [#allocation3], 16  }
   0xd   :  { %717 = vsyncadd [#allocation3], 4294967280 }
   0xe   :  { %41 = sfence }
   0xf   :  { %v696_v0 = vld [vmem:[%s874_s1 + $0x10] sm:$0xff]   ;;  %v697_v1 = vld [vmem:[%s874_s1 + $0x8] sm:$0xff]   ;;  %v43_v2 = vld [vmem:[%s873_s0] sm:$0xff]  ;;  %vm98_vm0 = vcmask 392192   ;;  %vm283_vm1 = vcmask 523264   ;;  %vm720_vm2 = vmmov 0  }
  0x10   :  { %624 = vmatprep.subr.bf16.mxu0 %v696_v0  ;;  %v44_v3 = vld [vmem:[%s873_s0 + $0x8] sm:$0xff]  ;;  %v698_v4 = vld [vmem:[%s874_s1] sm:$0xff]   ;;  %v45_v6 = vld [vmem:[%s873_s0 + $0x10] sm:$0xff]  ;;  %s525_s13 = sld [smem:[#allocation2]]  ;;  %vm543_vm3 = vcmask 1041408  }
  0x11   :  { %625 = vmatpush3.bf16.msra.mxu0 %v696_v0  ;;  %v59_v5 = vpack.c.bf16 %v44_v3, %v43_v2  ;;  %v46_v7 = vld [vmem:[%s873_s0 + $0x18] sm:$0xff]  ;;  %v47_v8 = vld [vmem:[%s873_s0 + $0x20] sm:$0xff]  ;;  %v48_v9 = vld [vmem:[%s873_s0 + $0x28] sm:$0xff]  ;;  %s589_s7 = sld [smem:[#allocation2 + $0x1]] }
  0x12   :  { %626 = vmatprep.subr.bf16.mxu0 %v697_v1  ;;  %v699_v10 = vld [vmem:[%s876_s3 + $0x18] sm:$0xff]   ;;  %v60_v11 = vpack.c.bf16 %v46_v7, %v45_v6  ;;  %v61_v12 = vpack.c.bf16 %v48_v9, %v47_v8  ;;  %v49_v13 = vld [vmem:[%s873_s0 + $0x30] sm:$0xff]  ;;  %v51_v15 = vld [vmem:[%s873_s0 + $0x40] sm:$0xff]  ;;  %s590_s14 = sld [smem:[#allocation2 + $0x2]] }
  0x13   :  { %630 = vmatprep.mubr.msk.bf16.mxu0 %vm98_vm0, %v59_v5  ;;  %646 = vmatprep.subr.bf16.mxu1 %v699_v10  ;;  %v50_v14 = vld [vmem:[%s873_s0 + $0x38] sm:$0xff]  ;;  %v52_v16 = vld [vmem:[%s873_s0 + $0x48] sm:$0xff]  ;;  %v53_v19 = vld [vmem:[%s873_s0 + $0x50] sm:$0xff]  ;;  %s588_s15 = sld [smem:[#allocation2 + $0x4]] }
  0x14   :  { %647 = vmatpush3.bf16.msra.mxu1 %v699_v10  ;;  %v62_v17 = vpack.c.bf16 %v50_v14, %v49_v13  ;;  %v63_v18 = vpack.c.bf16 %v52_v16, %v51_v15  ;;  %v54_v20 = vld [vmem:[%s873_s0 + $0x58] sm:$0xff]  ;;  %v55_v21 = vld [vmem:[%s873_s0 + $0x60] sm:$0xff]  ;;  %v56_v22 = vld [vmem:[%s873_s0 + $0x68] sm:$0xff]  ;;  %s591_s16 = sld [smem:[#allocation2 + $0x3]] }
  0x15   :  { %627 = vmatpush3.bf16.msra.mxu0 %v697_v1  ;;  %v64_v23 = vpack.c.bf16 %v54_v20, %v53_v19  ;;  %v65_v24 = vpack.c.bf16 %v56_v22, %v55_v21  ;;  %v57_v25 = vld [vmem:[%s873_s0 + $0x70] sm:$0xff]  ;;  %v58_v26 = vld [vmem:[%s873_s0 + $0x78] sm:$0xff]  ;;  %v701_v29 = vld [vmem:[%s876_s3 + $0x8] sm:$0xff]  }
  0x16   :  { %628 = vmatprep.subr.bf16.mxu0 %v698_v4  ;;  %v66_v27 = vpack.c.bf16 %v58_v26, %v57_v25  ;;  %v700_v28 = vld [vmem:[%s876_s3 + $0x10] sm:$0xff]   ;;  %v702_v30 = vld [vmem:[%s876_s3] sm:$0xff]  }
  0x17   :  { %648 = vmatprep.subr.bf16.mxu1 %v700_v28  ;;  %v562_v33 = vld [vmem:[%s875_s2] ss:$0 sm:$0xff] }
  0x18   :  { %649 = vmatpush3.bf16.msra.mxu1 %v700_v28  ;;  %v574_v25 = vld [vmem:[%s877_s4] ss:$0 sm:$0xff] }
  0x19   :  { %629 = vmatpush3.bf16.msra.mxu0 %v698_v4  ;;  %650 = vmatprep.subr.bf16.mxu1 %v701_v29 }
  0x1c   :  { %631 = vmatmul.mubr.msk.bf16.vlgmr.msra.gmra.mxu0 %vm98_vm0, %v60_v11  ;;  %651 = vmatpush3.bf16.msra.mxu1 %v701_v29 }
  0x1d   :  { %634 = vmatprep.mubr.msk.bf16.mxu0 %vm98_vm0, %v61_v12  ;;  %652 = vmatprep.subr.bf16.mxu1 %v702_v30 }
  0x20   :  { %653 = vmatpush3.bf16.msra.mxu1 %v702_v30 }
  0x24   :  { %635 = vmatmul.mubr.msk.bf16.gmra.mxu0 %vm98_vm0, %v62_v17 }
  0x25   :  { %638 = vmatprep.mubr.msk.bf16.mxu0 %vm98_vm0, %v63_v18 }
  0x2c   :  { %639 = vmatmul.mubr.msk.bf16.gmra.mxu0 %vm98_vm0, %v64_v23 }
  0x2d   :  { %642 = vmatprep.mubr.msk.bf16.mxu0 %vm98_vm0, %v65_v24 }
  0x34   :  { %643 = vmatmul.mubr.msk.bf16.gmra.mxu0 %vm98_vm0, %v66_v27 }
  0xdc   :  { %v632_v31 = vpop.f32.mrf.mxu0 }
  0xdd   :  { %v166_v37 = vadd.f32 %v632_v31, %v562_v33 }
  0xde   :  { %v157_v32 = vpop.f32.mrf.mxu0 }
  0xdf   :  { %v158_v35 = vadd.f32 %v562_v33, %v157_v32  ;;  %v222_v44 = vmax.f32 %v166_v37, 0.0 }
  0xe0   :  { %v633_v34 = vpop.f32.mrf.mxu0 }
  0xe1   :  { %v169_v36 = vadd.f32 %v633_v34, %v562_v33  ;;  %v220_v42 = vmax.f32 %v158_v35, 0.0 }
  0xe2   :  { %v160_v38 = vpop.f32.mrf.mxu0 }
  0xe3   :  { %v161_v39 = vadd.f32 %v562_v33, %v160_v38  ;;  %v223_v40 = vmax.f32 %v169_v36, 0.0 }
  0xe4   :  { %v636_v41 = vpop.f32.mrf.mxu0 }
  0xe5   :  { %v221_v43 = vmax.f32 %v161_v39, 0.0  ;;  %v182_v45 = vadd.f32 %v636_v41, %v562_v33  ;;  %v237_v49 = vpack.c.bf16 %v223_v40, %v222_v44 }
  0xe6   :  { %v173_v46 = vpop.f32.mrf.mxu0 }
  0xe7   :  { %v174_v47 = vadd.f32 %v562_v33, %v173_v46  ;;  %v236_v48 = vpack.c.bf16 %v221_v43, %v220_v42  ;;  %v226_v52 = vmax.f32 %v182_v45, 0.0 }
  0xe8   :  { %v637_v50 = vpop.f32.mrf.mxu0 }
  0xe9   :  { %v185_v51 = vadd.f32 %v637_v50, %v562_v33  ;;  %654 = vmatprep.mubr.msk.bf16.mxu1 %vm283_vm1, %v236_v48  ;;  %v224_v54 = vmax.f32 %v174_v47, 0.0 }
  0xea   :  { %v176_v53 = vpop.f32.mrf.mxu0  ;;  %655 = vmatmul.mubr.msk.bf16.vlgmr.msra.gmra.mxu1 %vm283_vm1, %v237_v49 }
  0xeb   :  { %v227_v55 = vmax.f32 %v185_v51, 0.0  ;;  %v177_v56 = vadd.f32 %v562_v33, %v176_v53 }
  0xec   :  { %v640_v57 = vpop.f32.mrf.mxu0 }
  0xed   :  { %v225_v58 = vmax.f32 %v177_v56, 0.0  ;;  %v239_v59 = vpack.c.bf16 %v227_v55, %v226_v52  ;;  %v198_v60 = vadd.f32 %v640_v57, %v562_v33 }
  0xee   :  { %v189_v61 = vpop.f32.mrf.mxu0 }
  0xef   :  { %v238_v62 = vpack.c.bf16 %v225_v58, %v224_v54  ;;  %v190_v63 = vadd.f32 %v562_v33, %v189_v61  ;;  %v230_v2 = vmax.f32 %v198_v60, 0.0 }
  0xf0   :  { %v641_v0 = vpop.f32.mrf.mxu0 }
  0xf1   :  { %658 = vmatprep.mubr.msk.bf16.mxu1 %vm283_vm1, %v238_v62  ;;  %v201_v1 = vadd.f32 %v641_v0, %v562_v33  ;;  %v228_v4 = vmax.f32 %v190_v63, 0.0 }
  0xf2   :  { %659 = vmatmul.mubr.msk.bf16.gmra.mxu1 %vm283_vm1, %v239_v59  ;;  %v192_v3 = vpop.f32.mrf.mxu0 }
  0xf3   :  { %v231_v5 = vmax.f32 %v201_v1, 0.0  ;;  %v193_v6 = vadd.f32 %v562_v33, %v192_v3 }
  0xf4   :  { %v644_v7 = vpop.f32.mrf.mxu0 }
  0xf5   :  { %v229_v8 = vmax.f32 %v193_v6, 0.0  ;;  %v241_v9 = vpack.c.bf16 %v231_v5, %v230_v2  ;;  %v214_v10 = vadd.f32 %v644_v7, %v562_v33 }
  0xf6   :  { %v205_v11 = vpop.f32.mrf.mxu0 }
  0xf7   :  { %v240_v12 = vpack.c.bf16 %v229_v8, %v228_v4  ;;  %v206_v13 = vadd.f32 %v562_v33, %v205_v11  ;;  %v234_v16 = vmax.f32 %v214_v10, 0.0  ;;  %v463_v10 = vld [vmem:[%s879_s6] sm:$0xff]  ;;  %v721_v11 = vmov 0  }
  0xf8   :  { %v645_v14 = vpop.f32.mrf.mxu0  ;;  %694 = vset.pattern.permute.xlu1 %v721_v11 }
  0xf9   :  { %662 = vmatprep.mubr.msk.bf16.mxu1 %vm283_vm1, %v240_v12  ;;  %v217_v15 = vadd.f32 %v645_v14, %v562_v33  ;;  %v232_v18 = vmax.f32 %v206_v13, 0.0  ;;  %467 = vperm.xlu1 %694, %v463_v10   ;;  %v464_v12 = vld [vmem:[%s879_s6 + $0x8] sm:$0xf] }
  0xfa   :  { %663 = vmatmul.mubr.msk.bf16.gmra.mxu1 %vm283_vm1, %v241_v9  ;;  %v208_v17 = vpop.f32.mrf.mxu0  ;;  %v719_v9 = vmov 0.0  }
  0xfb   :  { %v235_v19 = vmax.f32 %v217_v15, 0.0  ;;  %v209_v20 = vadd.f32 %v562_v33, %v208_v17  ;;  %670 = vmatprep.subr.bf16.mxu0 %v719_v9  ;;  %686 = vmatprep.mubr.msk.bf16.mxu0 %vm720_vm2, %v719_v9 }
  0xfd   :  { %v233_v21 = vmax.f32 %v209_v20, 0.0  ;;  %v243_v22 = vpack.c.bf16 %v235_v19, %v234_v16  ;;  %472 = vperm.xlu1 %694, %v464_v12  }
  0xff   :  { %v242_v23 = vpack.c.bf16 %v233_v21, %v232_v18 }
 0x101   :  { %666 = vmatprep.mubr.msk.bf16.mxu1 %vm283_vm1, %v242_v23 }
 0x102   :  { %667 = vmatmul.mubr.msk.bf16.gmra.mxu1 %vm283_vm1, %v243_v22 }
 0x1aa   :  { %v656_v24 = vpop.f32.mrf.mxu1 }
 0x1ab   :  { %v351_v33 = vadd.f32 %v656_v24, %v574_v25 }
 0x1ac   :  { %v342_v26 = vpop.f32.mrf.mxu1 }
 0x1ad   :  { %v343_v27 = vadd.f32 %v574_v25, %v342_v26  ;;  %v407_v36 = vmax.f32 %v351_v33, 0.0 }
 0x1ae   :  { %v657_v28 = vpop.f32.mrf.mxu1 }
 0x1af   :  { %v405_v29 = vmax.f32 %v343_v27, 0.0  ;;  %v354_v37 = vadd.f32 %v657_v28, %v574_v25 }
 0x1b0   :  { %v345_v30 = vpop.f32.mrf.mxu1 }
 0x1b1   :  { %v346_v31 = vadd.f32 %v574_v25, %v345_v30  ;;  %421 = vxpose.xlu0.b32.start [1/16] %v405_v29, 128  ;;  %v408_v39 = vmax.f32 %v354_v37, 0.0  ;;  %v703_v37 = vld [vmem:[%s878_s5] sm:$0x3f]  }
 0x1b2   :  { %v660_v32 = vpop.f32.mrf.mxu1 }
 0x1b3   :  { %v406_v34 = vmax.f32 %v346_v31, 0.0  ;;  %v367_v45 = vadd.f32 %v660_v32, %v574_v25 }
 0x1b4   :  { %v358_v35 = vpop.f32.mrf.mxu1 }
 0x1b5   :  { %422 = vxpose.xlu0.b32.cont [2/16] %v406_v34, 128  ;;  %v359_v40 = vadd.f32 %v574_v25, %v358_v35  ;;  %v411_v48 = vmax.f32 %v367_v45, 0.0 }
 0x1b6   :  { %v661_v38 = vpop.f32.mrf.mxu1 }
 0x1b7   :  { %v409_v42 = vmax.f32 %v359_v40, 0.0  ;;  %v370_v49 = vadd.f32 %v661_v38, %v574_v25  ;;  %v468_v38 = vpop.permute.xlu1 %467 }
 0x1b8   :  { %v361_v41 = vpop.f32.mrf.mxu1 }
 0x1b9   :  { %423 = vxpose.xlu0.b32.cont [3/16] %v407_v36, 128  ;;  %v362_v43 = vadd.f32 %v574_v25, %v361_v41  ;;  %v412_v51 = vmax.f32 %v370_v49, 0.0  ;;  %v526_v41 = vstv %s525_s13  ;;  %v528_v49 = vstv %s588_s15 }
 0x1ba   :  { %v664_v44 = vpop.f32.mrf.mxu1 }
 0x1bb   :  { %v410_v46 = vmax.f32 %v362_v43, 0.0  ;;  %v383_v57 = vadd.f32 %v664_v44, %v574_v25  ;;  %v473_v45 = vpop.permute.xlu1 %472 }
 0x1bc   :  { %v374_v47 = vpop.f32.mrf.mxu1 }
 0x1bd   :  { %424 = vxpose.xlu0.b32.cont [4/16] %v408_v39, 128  ;;  %v375_v52 = vadd.f32 %v574_v25, %v374_v47  ;;  %v415_v60 = vmax.f32 %v383_v57, 0.0  ;;  %v538_v47 = vstv %s590_s14 }
 0x1be   :  { %v665_v50 = vpop.f32.mrf.mxu1 }
 0x1bf   :  { %v413_v54 = vmax.f32 %v375_v52, 0.0  ;;  %v386_v61 = vadd.f32 %v665_v50, %v574_v25 }
 0x1c0   :  { %v377_v53 = vpop.f32.mrf.mxu1 }
 0x1c1   :  { %425 = vxpose.xlu0.b32.cont [5/16] %v409_v42, 128  ;;  %v378_v55 = vadd.f32 %v574_v25, %v377_v53  ;;  %v416_v63 = vmax.f32 %v386_v61, 0.0  ;;  %v531_v42 = vstv %s589_s7 }
 0x1c2   :  { %v668_v56 = vpop.f32.mrf.mxu1 }
 0x1c3   :  { %v414_v58 = vmax.f32 %v378_v55, 0.0  ;;  %v399_v4 = vadd.f32 %v668_v56, %v574_v25  ;;  %v550_v55 = vstv %s591_s16 }
 0x1c4   :  { %v390_v59 = vpop.f32.mrf.mxu1 }
 0x1c5   :  { %426 = vxpose.xlu0.b32.cont [6/16] %v410_v46, 128  ;;  %v391_v0 = vadd.f32 %v574_v25, %v390_v59  ;;  %v419_v6 = vmax.f32 %v399_v4, 0.0 }
 0x1c6   :  { %v669_v62 = vpop.f32.mrf.mxu1 }
 0x1c7   :  { %v417_v2 = vmax.f32 %v391_v0, 0.0  ;;  %v402_v7 = vadd.f32 %v669_v62, %v574_v25 }
 0x1c8   :  { %v393_v1 = vpop.f32.mrf.mxu1 }
 0x1c9   :  { %427 = vxpose.xlu0.b32.cont [7/16] %v411_v48, 128  ;;  %v394_v3 = vadd.f32 %v574_v25, %v393_v1  ;;  %v420_v8 = vmax.f32 %v402_v7, 0.0 }
 0x1cb   :  { %v418_v5 = vmax.f32 %v394_v3, 0.0 }
 0x1cd   :  { %428 = vxpose.xlu0.b32.cont [8/16] %v412_v51, 128 }
 0x1d1   :  { %429 = vxpose.xlu0.b32.cont [9/16] %v413_v54, 128 }
 0x1d5   :  { %430 = vxpose.xlu0.b32.cont [10/16] %v414_v58, 128 }
 0x1d9   :  { %431 = vxpose.xlu0.b32.cont [11/16] %v415_v60, 128 }
 0x1dd   :  { %432 = vxpose.xlu0.b32.cont [12/16] %v416_v63, 128 }
 0x1e1   :  { %433 = vxpose.xlu0.b32.cont [13/16] %v417_v2, 128 }
 0x1e5   :  { %434 = vxpose.xlu0.b32.cont [14/16] %v418_v5, 128 }
 0x1e9   :  { %435 = vxpose.xlu0.b32.cont [15/16] %v419_v6, 128 }
 0x1ed   :  { %436 = vxpose.xlu0.b32.end [16/16] %v420_v8, 128 }
 0x216   :  { %695 = vset.pattern.permute.xlu0 %v721_v11 }
 0x22d   :  { %v437_v13 = vpop.trf.xlu0 }
 0x231   :  { %v438_v14 = vpop.trf.xlu0 }
 0x232   :  { %v455_v15 = vpack.c.bf16 %v438_v14, %v437_v13 }
 0x235   :  { %v439_v16 = vpop.trf.xlu0 }
 0x239   :  { %v440_v17 = vpop.trf.xlu0 }
 0x23a   :  { %v456_v18 = vpack.c.bf16 %v440_v17, %v439_v16 }
 0x23d   :  { %v441_v19 = vpop.trf.xlu0 }
 0x241   :  { %v442_v20 = vpop.trf.xlu0 }
 0x242   :  { %v457_v36 = vpack.c.bf16 %v442_v20, %v441_v19 }
 0x245   :  { %v443_v21 = vpop.trf.xlu0 }
 0x249   :  { %v444_v22 = vpop.trf.xlu0 }
 0x24a   :  { %v458_v35 = vpack.c.bf16 %v444_v22, %v443_v21 }
 0x24d   :  { %v445_v23 = vpop.trf.xlu0 }
 0x251   :  { %v446_v24 = vpop.trf.xlu0 }
 0x252   :  { %v459_v34 = vpack.c.bf16 %v446_v24, %v445_v23 }
 0x255   :  { %v447_v25 = vpop.trf.xlu0 }
 0x259   :  { %v448_v26 = vpop.trf.xlu0 }
 0x25a   :  { %v460_v33 = vpack.c.bf16 %v448_v26, %v447_v25 }
 0x25d   :  { %v449_v27 = vpop.trf.xlu0 }
 0x261   :  { %v450_v28 = vpop.trf.xlu0 }
 0x262   :  { %v461_v32 = vpack.c.bf16 %v450_v28, %v449_v27 }
 0x265   :  { %v451_v29 = vpop.trf.xlu0 }
 0x269   :  { %v452_v30 = vpop.trf.xlu0 }
 0x26a   :  { %v462_v31 = vpack.c.bf16 %v452_v30, %v451_v29 }
 0x26c   :  { %671 = vmatpush3.bf16.msra.mxu0 %v462_v31 }
 0x26d   :  { %672 = vmatprep.subr.bf16.mxu0 %v719_v9 }
 0x270   :  { %673 = vmatpush3.bf16.msra.mxu0 %v461_v32 }
 0x271   :  { %674 = vmatprep.subr.bf16.mxu0 %v719_v9 }
 0x274   :  { %675 = vmatpush3.bf16.msra.mxu0 %v460_v33 }
 0x275   :  { %676 = vmatprep.subr.bf16.mxu0 %v719_v9 }
 0x278   :  { %677 = vmatpush3.bf16.msra.mxu0 %v459_v34 }
 0x279   :  { %678 = vmatprep.subr.bf16.mxu0 %v719_v9 }
 0x27c   :  { %679 = vmatpush3.bf16.msra.mxu0 %v458_v35 }
 0x27d   :  { %680 = vmatprep.subr.bf16.mxu0 %v719_v9 }
 0x280   :  { %681 = vmatpush3.bf16.msra.mxu0 %v457_v36 }
 0x281   :  { %682 = vmatprep.subr.bf16.mxu0 %v719_v9 }
 0x284   :  { %683 = vmatpush3.bf16.msra.mxu0 %v456_v18 }
 0x285   :  { %684 = vmatprep.subr.bf16.mxu0 %v719_v9 }
 0x288   :  { %685 = vmatpush3.bf16.msra.mxu0 %v455_v15 }
 0x28b   :  { %687 = vmatmul.mubr.bf16.vlgmr.msra.gmra.mxu0 %v703_v37 }
 0x34b   :  { %v515_v39 = vpop.f32.mrf.mxu0 }
 0x34c   :  { %v516_v40 = vadd.f32 %v515_v39, %v468_v38 }
 0x34d   :  { %v688_v43 = vpop.f32.mrf.mxu0 }
 0x34e   :  { %v522_v44 = vmax.f32 %v516_v40, 0.0 }
 0x34f   :  { %v518_v46 = vpop.f32.mrf.mxu0 }
 0x350   :  { %v527_v48 = vmul.f32 %v526_v41, %v522_v44  ;;  %v532_v50 = vmul.f32 %v531_v42, %v522_v44  ;;  %v519_v51 = vadd.f32 %v518_v46, %v473_v45  ;;  %v539_v54 = vmul.f32 %v538_v47, %v522_v44 }
 0x351   :  { %v689_v52 = vpop.f32.mrf.mxu0 }
 0x352   :  { %v523_v53 = vmax.f32 %v519_v51, 0.0  ;;  %v529_v56 = vadd.f32 %v528_v49, %v527_v48  ;;  %v534_v57 = vrot.slane %v532_v50, 3  ;;  %v544_v60 = vrot.slane %v539_v54, 6 }
 0x354   :  { %v540_v58 = vmul.f32 %v538_v47, %v523_v53  ;;  %v551_v59 = vmul.f32 %v550_v55, %v523_v53  ;;  %v536_v62 = vadd.f32 %v534_v57, %v529_v56 }
 0x356   :  { %v545_v61 = vrot.slane %v540_v58, 6  ;;  %v553_v1 = vrot.slane %v551_v59, 1 }
 0x358   :  { %v546_v63 = vsel %vm543_vm3, %v544_v60, %v545_v61 }
 0x359   :  { %v548_v0 = vadd.f32 %v546_v63, %v536_v62 }
 0x35b   :  { %v555_v2 = vadd.f32 %v553_v1, %v548_v0 }
 0x35d   :  { %556 = vst [vmem:[%s881_s8] sm:$0x7] %v555_v2 }
 0x35e   :  { %561 = vsyncpa [#allocation3], 1 }

</bundles_post_ra>
